<compile_context>
chip_gen: v5e
topology: v5e:2x2
jax: 0.10.0
libtpu: 0.0.40
codegen_flags: <defaults>
</compile_context>

<pallas_src>
import functools

import jax
import jax.numpy as jnp
from jax.experimental import pallas as pl
from jax.experimental.pallas import tpu as pltpu


def _label_smooth_ce_kernel(x_ref, t_ref, o_ref, *, epsilon: float,
                            batch: int, block_rows: int, compute_dtype):
    """One batch tile; writes the tile's partial loss sum (un-normalized).

    x_ref: (TB, K) float logits in VMEM
    t_ref: (TB, 1) int32 labels in VMEM
    o_ref: (1, 1, 128) float32 partial-sum block (value broadcast over lanes)
    """
    i = pl.program_id(0)
    # astype to the same dtype is a no-op, so this is free for matching dtypes.
    x = x_ref[...].astype(compute_dtype)          # (TB, K)
    tb, k = x.shape

    # Numerically stable log-softmax pieces (no dense log_probs materialized).
    m = jnp.max(x, axis=1, keepdims=True)         # (TB, 1)
    shifted = x - m                               # (TB, K), compute dtype
    # exp in the compute dtype (bf16 EUP on v6e/v7x), accumulate in fp32.
    lse = jnp.log(jnp.sum(jnp.exp(shifted), axis=1, keepdims=True,
                          dtype=jnp.float32))     # (TB, 1) fp32

    # Fused label + smoothing weights; they sum to 1 per row, so
    #   loss_row = lse - sum_c w[c] * shifted[c].
    labels = t_ref[...]                           # (TB, 1) int32
    class_idx = jax.lax.broadcasted_iota(jnp.int32, (tb, k), 1)
    w_hit = jnp.asarray((1.0 - epsilon) + epsilon / k, dtype=compute_dtype)
    w_miss = jnp.asarray(epsilon / k, dtype=compute_dtype)
    w = jnp.where(class_idx == labels, w_hit, w_miss)          # (TB, K)
    wsum = jnp.sum(w * shifted, axis=1, keepdims=True,
                   dtype=jnp.float32)                          # (TB, 1) fp32

    loss_rows = lse - wsum                        # (TB, 1) fp32

    # Ragged last tile: zero padded rows. This is the ONLY mask needed —
    # per-row reductions mean pad-region garbage (even NaN/Inf) cannot leak
    # into valid rows, and the select here replaces any such garbage with 0.
    row_ids = i * block_rows + jax.lax.broadcasted_iota(jnp.int32, (tb, 1), 0)
    loss_rows = jnp.where(row_ids < batch, loss_rows, 0.0)

    o_ref[...] = jnp.zeros_like(o_ref) + jnp.sum(loss_rows)


def _vmem_capacity_bytes() -> int:
    try:
        return int(pltpu.get_tpu_info().vmem_capacity_bytes)
    except Exception:
        return 64 * 1024 * 1024   # conservative (v7x per-TC)


def _device_supports_bf16_vpu() -> bool:
    # v2-v5 VPUs/EUPs have no packed bf16; v6e and v7x do.
    try:
        kind = jax.devices()[0].device_kind.lower()
    except Exception:
        return False
    return not any(tag in kind for tag in ("v2", "v3", "v4", "v5"))


def cross_entropy_label_smooth(inputs, targets, *, num_classes, epsilon=0.1,
                               block_rows=None, compute_dtype=None):
    """inputs: (B, num_classes) float logits; targets: (B,) int labels.

    Returns the scalar size_average=True loss of CrossEntropyLabelSmooth.
    """
    b, k = inputs.shape
    assert k == num_classes
    itemsize = jnp.dtype(inputs.dtype).itemsize

    # Elementwise math dtype: keep bf16 on chips with a bf16 VPU/EUP, else fp32.
    if compute_dtype is None:
        if inputs.dtype == jnp.bfloat16 and _device_supports_bf16_vpu():
            compute_dtype = jnp.bfloat16
        else:
            compute_dtype = jnp.float32
    compute_itemsize = jnp.dtype(compute_dtype).itemsize

    # Tile sizing from the chip's real VMEM capacity (64 MiB/TC on v7x,
    # 128 MiB on v5e/v6e). Per-row working set: 2x-buffered input tile,
    # ~3 compute-dtype tile temporaries (shifted / exp / weighted product),
    # one fp32 reduce temp, and the lane-padded int32 labels (2 buffers).
    vmem_cap = _vmem_capacity_bytes()
    bytes_per_row = k * (2 * itemsize + 3 * compute_itemsize + 4) + 2 * 128 * 4
    if block_rows is None:
        budget = int(vmem_cap * 0.45)           # leave compiler headroom
        rows_fit = max(8, budget // max(1, bytes_per_row))
        rows_fit = int(min(rows_fit, 2048))
        block_rows = b if b <= rows_fit else (rows_fit // 8) * 8
    block_rows = int(block_rows)
    grid = pl.cdiv(b, block_rows)

    targets_2d = targets.astype(jnp.int32).reshape(b, 1)

    kernel = functools.partial(
        _label_smooth_ce_kernel,
        epsilon=float(epsilon), batch=b, block_rows=block_rows,
        compute_dtype=compute_dtype)

    # Scoped-VMEM limit: cover the estimated working set but stay well below
    # physical capacity (~75% cap => <= 48 MiB on the 64 MiB v7x part).
    est = block_rows * bytes_per_row + (2 << 20)
    vmem_limit = int(min(int(vmem_cap * 0.75), max(16 << 20, est)))

    cost = pl.CostEstimate(
        flops=5 * b * k,
        transcendentals=b * k + b,
        bytes_accessed=b * k * itemsize + b * 4 + grid * 128 * 4,
    )

    partials = pl.pallas_call(
        kernel,
        out_shape=jax.ShapeDtypeStruct((grid, 1, 128), jnp.float32),
        grid_spec=pltpu.PrefetchScalarGridSpec(
            num_scalar_prefetch=0,
            grid=(grid,),
            in_specs=[
                pl.BlockSpec((block_rows, k), lambda i: (i, 0)),   # logits tile
                pl.BlockSpec((block_rows, 1), lambda i: (i, 0)),   # labels tile
            ],
            out_specs=pl.BlockSpec((1, 1, 128), lambda i: (i, 0, 0)),
        ),
        compiler_params=pltpu.CompilerParams(
            dimension_semantics=("parallel",),
            vmem_limit_bytes=vmem_limit,
        ),
        cost_estimate=cost,
    )(inputs, targets_2d)

    # size_average=True: (-targets * log_probs).mean(0).sum() == total / B
    return jnp.sum(partials[:, 0, 0]) / b


def _reference(logits, labels, num_classes, epsilon):
    log_probs = jax.nn.log_softmax(logits.astype(jnp.float32), axis=1)
    onehot = jax.nn.one_hot(labels, num_classes, dtype=jnp.float32)
    smoothed = (1.0 - epsilon) * onehot + epsilon / num_classes
    return jnp.sum(jnp.mean(-smoothed * log_probs, axis=0))


if __name__ == "__main__":
    key = jax.random.PRNGKey(0)
    k1, k2, k3, k4, k5, k6 = jax.random.split(key, 6)

    # Case 1: small, single-tile, fp32.
    batch, num_classes = 8, 16
    logits = jax.random.normal(k1, (batch, num_classes), dtype=jnp.float32)
    labels = jax.random.randint(k2, (batch,), 0, num_classes, dtype=jnp.int32)

    loss = cross_entropy_label_smooth(
        logits, labels, num_classes=num_classes, epsilon=0.1)
    jax.block_until_ready(loss)
    ref = _reference(logits, labels, num_classes, 0.1)
    assert jnp.allclose(loss, ref, rtol=1e-5, atol=1e-5), (loss, ref)

    # Case 2: multi-tile grid with a ragged (masked) last tile.
    batch2 = 20
    logits2 = jax.random.normal(k3, (batch2, num_classes), dtype=jnp.float32)
    labels2 = jax.random.randint(k4, (batch2,), 0, num_classes, dtype=jnp.int32)

    loss2 = cross_entropy_label_smooth(
        logits2, labels2, num_classes=num_classes, epsilon=0.1, block_rows=8)
    jax.block_until_ready(loss2)
    ref2 = _reference(logits2, labels2, num_classes, 0.1)
    assert jnp.allclose(loss2, ref2, rtol=1e-5, atol=1e-5), (loss2, ref2)

    # Case 3: bf16 logits (bf16 in-kernel math on v6e/v7x, fp32 on v5e).
    logits3 = jax.random.normal(k5, (batch, num_classes),
                                dtype=jnp.float32).astype(jnp.bfloat16)
    labels3 = jax.random.randint(k6, (batch,), 0, num_classes, dtype=jnp.int32)
    loss3 = cross_entropy_label_smooth(
        logits3, labels3, num_classes=num_classes, epsilon=0.1)
    jax.block_until_ready(loss3)
    ref3 = _reference(logits3, labels3, num_classes, 0.1)
    assert jnp.allclose(loss3, ref3, rtol=5e-2, atol=5e-2), (loss3, ref3)

    print("KERNEL_OK")
</pallas_src>

<mosaic_0001>
module attributes {stable_mosaic.version = 11 : i64} {
  func.func @_label_smooth_ce_kernel(%arg0: i32, %arg1: memref<8x16xf32, #tpu.memory_space<vmem>>, %arg2: memref<8x1xi32, #tpu.memory_space<vmem>>, %arg3: memref<1x1x128xf32, #tpu.memory_space<vmem>>) attributes {dimension_semantics = [#tpu.dimension_semantics<parallel>], iteration_bounds = array<i64: 1>, scalar_prefetch = 0 : i64, scratch_operands = 0 : i64, tpu.core_type = #tpu.core_type<tc>, window_params = [{transform_indices = @transform_0, window_bounds = array<i64: 8, 16>}, {transform_indices = @transform_1, window_bounds = array<i64: 8, 1>}, {transform_indices = @transform_2, window_bounds = array<i64: 1, 1, 128>}]} {
    %c0 = arith.constant 0 : index
    %c0_0 = arith.constant 0 : index
    %0 = vector.load %arg1[%c0, %c0_0] : memref<8x16xf32, #tpu.memory_space<vmem>>, vector<8x16xf32>
    %cst = arith.constant dense<0xFF800000> : vector<8xf32>
    %1 = vector.multi_reduction <maximumf>, %0, %cst [1] : vector<8x16xf32> to vector<8xf32>
    %2 = vector.shape_cast %1 : vector<8xf32> to vector<8x1xf32>
    %3 = vector.broadcast %2 : vector<8x1xf32> to vector<8x16xf32>
    %4 = arith.subf %0, %3 : vector<8x16xf32>
    %5 = math.exp %4 : vector<8x16xf32>
    %cst_1 = arith.constant dense<0.000000e+00> : vector<8xf32>
    %6 = vector.multi_reduction <add>, %5, %cst_1 [1] : vector<8x16xf32> to vector<8xf32>
    %7 = vector.shape_cast %6 : vector<8xf32> to vector<8x1xf32>
    %8 = math.log %7 : vector<8x1xf32>
    %c0_2 = arith.constant 0 : index
    %c0_3 = arith.constant 0 : index
    %9 = vector.load %arg2[%c0_2, %c0_3] : memref<8x1xi32, #tpu.memory_space<vmem>>, vector<8x1xi32>
    %10 = tpu.iota {dimensions = array<i32: 1>} : vector<8x16xi32>
    %11 = vector.broadcast %9 : vector<8x1xi32> to vector<8x16xi32>
    %12 = arith.cmpi eq, %10, %11 : vector<8x16xi32>
    %cst_4 = arith.constant 9.062500e-01 : f32
    %cst_5 = arith.constant 6.250000e-03 : f32
    %13 = vector.broadcast %cst_4 : f32 to vector<8x16xf32>
    %14 = vector.broadcast %cst_5 : f32 to vector<8x16xf32>
    %15 = arith.select %12, %13, %14 : vector<8x16xi1>, vector<8x16xf32>
    %16 = arith.mulf %15, %4 : vector<8x16xf32>
    %cst_6 = arith.constant dense<0.000000e+00> : vector<8xf32>
    %17 = vector.multi_reduction <add>, %16, %cst_6 [1] : vector<8x16xf32> to vector<8xf32>
    %18 = vector.shape_cast %17 : vector<8xf32> to vector<8x1xf32>
    %19 = arith.subf %8, %18 : vector<8x1xf32>
    %c8_i32 = arith.constant 8 : i32
    %20 = arith.muli %arg0, %c8_i32 : i32
    %21 = tpu.iota {dimensions = array<i32: 0>} : vector<8x1xi32>
    %22 = vector.broadcast %20 : i32 to vector<8x1xi32>
    %23 = arith.addi %22, %21 : vector<8x1xi32>
    %c8_i32_7 = arith.constant 8 : i32
    %24 = vector.broadcast %c8_i32_7 : i32 to vector<8x1xi32>
    %25 = arith.cmpi slt, %23, %24 : vector<8x1xi32>
    %cst_8 = arith.constant 0.000000e+00 : f32
    %26 = vector.broadcast %cst_8 : f32 to vector<8x1xf32>
    %27 = arith.select %25, %19, %26 : vector<8x1xi1>, vector<8x1xf32>
    %cst_9 = arith.constant 0.000000e+00 : f32
    %28 = vector.broadcast %cst_9 : f32 to vector<1x1x128xf32>
    %29 = vector.shape_cast %27 : vector<8x1xf32> to vector<1x8x1xf32>
    %cst_10 = arith.constant dense<0.000000e+00> : vector<1xf32>
    %30 = vector.multi_reduction <add>, %29, %cst_10 [1, 2] : vector<1x8x1xf32> to vector<1xf32>
    %31 = vector.shape_cast %30 : vector<1xf32> to vector<1x1x1xf32>
    %32 = vector.extract %31[0, 0, 0] : f32 from vector<1x1x1xf32>
    %33 = vector.broadcast %32 : f32 to vector<1x1x128xf32>
    %34 = arith.addf %28, %33 : vector<1x1x128xf32>
    %c0_11 = arith.constant 0 : index
    %c0_12 = arith.constant 0 : index
    %c0_13 = arith.constant 0 : index
    %35 = vector.load %arg3[%c0_11, %c0_12, %c0_13] : memref<1x1x128xf32, #tpu.memory_space<vmem>>, vector<1x1x128xf32>
    tpu.vector_store %arg3[%c0_11, %c0_12, %c0_13], %34 {strides = array<i32>} : memref<1x1x128xf32, #tpu.memory_space<vmem>>, vector<1x1x128xf32>,
    return
  }
  func.func @transform_0(%arg0: i32) -> (i32, i32) {
    %c0_i32 = arith.constant 0 : i32
    %c0_i32_0 = arith.constant 0 : i32
    return %arg0, %c0_i32 : i32, i32
  }
  func.func @transform_1(%arg0: i32) -> (i32, i32) {
    %c0_i32 = arith.constant 0 : i32
    %c0_i32_0 = arith.constant 0 : i32
    return %arg0, %c0_i32 : i32, i32
  }
  func.func @transform_2(%arg0: i32) -> (i32, i32, i32) {
    %c0_i32 = arith.constant 0 : i32
    %c0_i32_0 = arith.constant 0 : i32
    %c0_i32_1 = arith.constant 0 : i32
    return %arg0, %c0_i32, %c0_i32_0 : i32, i32, i32
  }
}

</mosaic_0001>

<bundles_post_ra>
// kernel: tpu_custom_call.1
= control target key start
LH: loop header
LB: loop body
LE: loop exit
PB: predicated region body
PF: predicated region fallthrough
CT: control target
= control target key end

     0   :  { %vm13_vm0 = vcmask 130048   ;;  %s141_s0 = inlined_call_operand.vmem [shape: f32[8,16], index: 0, kind: input, shape index: {}]   ;;  %s142_s1 = inlined_call_operand.vmem [shape: s32[8,1], index: 1, kind: input, shape index: {}]   ;;  %s143_s2 = inlined_call_operand.hbm [shape: f32[1,1,128], index: 2, kind: output, shape index: {}]  }
   0x1   :  { %v12_v0 = vld [vmem:[%s141_s0] sm:$0xff] }
   0x2   :  { %7 = vsyncpa [#allocation3], 0  ;;  %v14_v1 = vsel %vm13_vm0, %v12_v0, -inf  ;;  %v111_v2 = vmov 0   ;;  %v25_v3 = vld [vmem:[%s142_s1] sm:$0xff]  ;;  %v26_v9 = vlaneseq  ;;  %vm45_vm2 = vcmask 7168  }
   0x3   :  { %80 = vset.pattern.permute.xlu0 %v111_v2  ;;  %v112_v12 = vmov 0.00625   ;;  %s113_s0 = smov [#allocation2]   ;;  %s66_s15 = sshll.u32 %s143_s2, 4  ;;  %s67_s15 = int_to_ptr.hbm [resolvable:$true] %s66_s15 }
   0x4   :  { %15 = vmax.xlane.f32.xlu0 %v14_v1  ;;  %v27_v10 = vand.u32 127, %v26_v9  ;;  %s64_s1 = sshll.u32 %s113_s0, 4  ;;  %s65_s1 = int_to_ptr.vmem [resolvable:$true] %s64_s1 }
  0x18   :  { %29 = vperm.xlu0 %80, %v25_v3  }
  0x77   :  { %v16_v4 = vpop.xlane.xlu0 %15 }
  0x78   :  { %v17_v5 = vsub.f32 %v12_v0, %v16_v4 }
  0x7a   :  { %v18_v6 = vmul.f32 1.442695, %v17_v5 }
  0x7c   :  { %81 = vpow2.f32 %v18_v6 }
  0x82   :  { %v82_v7 = vpop.eup %81 }
  0x83   :  { %v20_v8 = vsel %vm13_vm0, %v82_v7, 0.0 }
  0x84   :  { %21 = vadd.xlane.f32.xlu1 %v20_v8 }
  0x8a   :  { %v30_v11 = vpop.permute.xlu0 %29 }
  0x8b   :  { %vm31_vm1 = vcmp.eq.s32.totalorder %v27_v10, %v30_v11 }
  0x8c   :  { %v32_v13 = vsel %vm31_vm1, 0.90625, %v112_v12 }
  0x8d   :  { %v33_v14 = vmul.f32 %v32_v13, %v17_v5 }
  0x8f   :  { %v34_v15 = vsel %vm13_vm0, %v33_v14, 0.0 }
  0x90   :  { %35 = vadd.xlane.f32.xlu1 %v34_v15 }
  0xf7   :  { %v22_v16 = vpop.xlane.xlu1 %21 }
  0xf8   :  { %83 = vlog2.f32 %v22_v16 }
  0xfe   :  { %v84_v17 = vpop.eup %83 }
  0xff   :  { %v24_v18 = vmul.f32 0.6931472, %v84_v17 }
 0x103   :  { %v36_v19 = vpop.xlane.xlu1 %35 }
 0x104   :  { %v37_v20 = vsub.f32 %v24_v18, %v36_v19 }
 0x106   :  { %v46_v21 = vsel %vm45_vm2, %v37_v20, 0.0 }
 0x107   :  { %47 = vadd.xlane.f32.xlu2 %v46_v21 }
 0x17a   :  { %v48_v22 = vpop.xlane.xlu2 %47 }
 0x17b   :  { %v49_v23 = vrot.slane %v48_v22, 4 }
 0x17d   :  { %v50_v24 = vadd.f32 %v49_v23, %v48_v22 }
 0x17f   :  { %v51_v25 = vrot.slane %v50_v24, 2 }
 0x181   :  { %v52_v26 = vadd.f32 %v51_v25, %v50_v24 }
 0x183   :  { %v53_v27 = vrot.slane %v52_v26, 1 }
 0x185   :  { %v54_v28 = vadd.f32 %v53_v27, %v52_v26 }
 0x187   :  { %75 = vpush %v54_v28 }
 0x1b8   :  { %s76_s16 = spop %75 }
 0x1b9   :  { %v56_v29 = vstv %s76_s16 }
 0x1ba   :  { %58 = vst [vmem:[#allocation2] sm:$0x1] %v56_v29 }
 0x1bb   :  { %69 = dma.vmem_to_hbm [thread:$0]  %s65_s1, 16, %s67_s15, [#allocation3]  }
 0x1bc   :  { %109 = dma.done.wait [#allocation3], 16  }
 0x1bd   :  { %110 = vsyncadd [#allocation3], 4294967280 }
 0x1be   :  { %74 = vsyncpa [#allocation3], 1 }

</bundles_post_ra>
